<compile_context>
chip_gen: v6e
topology: v6e:2x2x1
jax: 0.10.0
libtpu: 0.0.40
codegen_flags: <defaults>
</compile_context>

<pallas_src>
import jax
import jax.numpy as jnp
from jax.experimental import pallas as pl
from jax.experimental.pallas import tpu as pltpu


def residual_linear_kernel(x_ref, w_ref, b_ref, o_ref):
    """out = x @ W + b + x  (fn(x) + residual, fused in one pass).

    MXU gets bf16 feeds (x cast on the fly, W pre-cast in the wrapper) with
    f32 accumulation; bias + residual adds stay in f32 on the VPU and only the
    final store downcasts to the output dtype.
    """
    x = x_ref[...]                                           # (TM, D), input dtype
    y = jnp.dot(x.astype(jnp.bfloat16), w_ref[...],          # w_ref is bf16
                preferred_element_type=jnp.float32)
    y = y + b_ref[...]                                       # f32 bias, (1, D) bcast
    o_ref[...] = (y + x.astype(jnp.float32)).astype(o_ref.dtype)


def _round_up(a, b):
    return (a + b - 1) // b * b


def residual_add(x, w, b, *, tm=512):
    """ResidualAdd(fn=Linear(D, D)): returns fn(x) + x.

    x: (B, S, D) activations; w: (D, D) weight; b: (D,) bias.
    """
    B, S, D = x.shape
    M = B * S
    tm = _round_up(max(tm, 8), 8)

    # Token-tile selection.  Ragged last tiles are fine (OOB rows are garbage
    # in, masked out on store), so no padding of M is needed.  For small M we
    # still split into >= 2 tiles so both v7x TensorCores get work.
    if M <= 8:
        TM = M                                  # single tile == full token dim
    elif M <= tm:
        TM = _round_up(pl.cdiv(M, 2), 8)        # >= 2 parallel grid steps
    else:
        TM = tm                                 # MXU-aligned (512 = 2x256 / 4x128)
    grid = (pl.cdiv(M, TM),)

    x2 = x.reshape(M, D)                        # residual path keeps input dtype
    wb = w.astype(jnp.bfloat16)                 # bf16 feed for the MXU
    bf = b.astype(jnp.float32).reshape(1, D)    # bias stays f32

    x_bytes = jnp.dtype(x.dtype).itemsize
    o_bytes = x_bytes
    w_bytes = jnp.dtype(wb.dtype).itemsize
    b_bytes = jnp.dtype(bf.dtype).itemsize

    cost = pl.CostEstimate(
        flops=2 * M * D * D,
        transcendentals=0,
        bytes_accessed=M * D * (x_bytes + o_bytes) + D * D * w_bytes + D * b_bytes,
    )

    # Actual VMEM footprint: double-buffered x/out tiles + single-buffered W/b.
    footprint = (2 * TM * D * x_bytes + 2 * TM * D * o_bytes
                 + D * D * w_bytes + D * b_bytes)
    vmem_limit = int(min(max(2 * footprint, 32 << 20), 48 << 20))

    out2 = pl.pallas_call(
        residual_linear_kernel,
        out_shape=jax.ShapeDtypeStruct((M, D), x.dtype),
        grid_spec=pltpu.PrefetchScalarGridSpec(
            num_scalar_prefetch=0,
            grid=grid,
            in_specs=[
                # x tile moves with the grid: default double-buffering overlaps
                # DMA of tile i+1 with compute of tile i.
                pl.BlockSpec((TM, D), lambda i: (i, 0)),
                # W and b never change across grid steps -> single buffer.
                pl.BlockSpec((D, D), lambda i: (0, 0),
                             pipeline_mode=pl.Buffered(1)),
                pl.BlockSpec((1, D), lambda i: (0, 0),
                             pipeline_mode=pl.Buffered(1)),
            ],
            out_specs=pl.BlockSpec((TM, D), lambda i: (i, 0)),
        ),
        compiler_params=pltpu.CompilerParams(
            dimension_semantics=("parallel",),
            vmem_limit_bytes=vmem_limit,
        ),
        cost_estimate=cost,
    )(x2, wb, bf)

    return out2.reshape(B, S, D)


if __name__ == "__main__":
    # Small ViT-ish shapes: batch=2, seq=8, hidden=32
    B, S, D = 2, 8, 32
    key = jax.random.PRNGKey(0)
    kx, kw, kb = jax.random.split(key, 3)

    x = jax.random.normal(kx, (B, S, D), dtype=jnp.float32)
    # Deterministic parameter init for the wrapped fn (Linear D -> D).
    w = jax.random.normal(kw, (D, D), dtype=jnp.float32) * (1.0 / jnp.sqrt(D))
    b = jax.random.normal(kb, (D,), dtype=jnp.float32) * 0.01

    out = residual_add(x, w, b)
    jax.block_until_ready(out)

    # Reference: fn(x) + x with the same bf16 MXU feeds (f32 accumulation),
    # bias and residual in f32 — matches the kernel's numerics.
    xb = x.astype(jnp.bfloat16).astype(jnp.float32)
    wb = w.astype(jnp.bfloat16).astype(jnp.float32)
    ref = jnp.einsum("bsd,de->bse", xb, wb) + b + x
    assert jnp.allclose(out, ref, atol=1e-3, rtol=1e-3), "mismatch vs reference"

    print("KERNEL_OK")
</pallas_src>

<mosaic_0001>
module attributes {stable_mosaic.version = 11 : i64} {
  func.func @residual_linear_kernel(%arg0: i32, %arg1: memref<8x32xf32, #tpu.memory_space<vmem>>, %arg2: memref<32x32xbf16, #tpu.memory_space<vmem>>, %arg3: memref<1x32xf32, #tpu.memory_space<vmem>>, %arg4: memref<8x32xf32, #tpu.memory_space<vmem>>) attributes {dimension_semantics = [#tpu.dimension_semantics<parallel>], iteration_bounds = array<i64: 2>, scalar_prefetch = 0 : i64, scratch_operands = 0 : i64, tpu.core_type = #tpu.core_type<tc>, window_params = [{transform_indices = @transform_0, window_bounds = array<i64: 8, 32>}, {pipeline_mode = #tpu.pipeline_mode<synchronous>, transform_indices = @transform_1, window_bounds = array<i64: 32, 32>}, {pipeline_mode = #tpu.pipeline_mode<synchronous>, transform_indices = @transform_2, window_bounds = array<i64: 1, 32>}, {transform_indices = @transform_3, window_bounds = array<i64: 8, 32>}]} {
    %c0 = arith.constant 0 : index
    %c0_0 = arith.constant 0 : index
    %0 = vector.load %arg1[%c0, %c0_0] : memref<8x32xf32, #tpu.memory_space<vmem>>, vector<8x32xf32>
    %1 = arith.truncf %0 : vector<8x32xf32> to vector<8x32xbf16>
    %c0_1 = arith.constant 0 : index
    %c0_2 = arith.constant 0 : index
    %2 = vector.load %arg2[%c0_1, %c0_2] : memref<32x32xbf16, #tpu.memory_space<vmem>>, vector<32x32xbf16>
    %cst = arith.constant dense<0.000000e+00> : vector<8x32xf32>
    %3 = tpu.matmul %1, %2, %cst {dimension_numbers = #tpu.dot_dimension_numbers<[1], [0], [0], [1], [0, 0, 1, 1], [], []>} : vector<8x32xbf16>, vector<32x32xbf16>, vector<8x32xf32> -> vector<8x32xf32>
    %c0_3 = arith.constant 0 : index
    %c0_4 = arith.constant 0 : index
    %4 = vector.load %arg3[%c0_3, %c0_4] : memref<1x32xf32, #tpu.memory_space<vmem>>, vector<1x32xf32>
    %5 = vector.broadcast %4 : vector<1x32xf32> to vector<8x32xf32>
    %6 = arith.addf %3, %5 : vector<8x32xf32>
    %7 = arith.addf %6, %0 : vector<8x32xf32>
    %c0_5 = arith.constant 0 : index
    %c0_6 = arith.constant 0 : index
    %8 = vector.load %arg4[%c0_5, %c0_6] : memref<8x32xf32, #tpu.memory_space<vmem>>, vector<8x32xf32>
    tpu.vector_store %arg4[%c0_5, %c0_6], %7 {strides = array<i32>} : memref<8x32xf32, #tpu.memory_space<vmem>>, vector<8x32xf32>,
    return
  }
  func.func @transform_0(%arg0: i32) -> (i32, i32) {
    %c0_i32 = arith.constant 0 : i32
    %c0_i32_0 = arith.constant 0 : i32
    return %arg0, %c0_i32 : i32, i32
  }
  func.func @transform_1(%arg0: i32) -> (i32, i32) {
    %c0_i32 = arith.constant 0 : i32
    %c0_i32_0 = arith.constant 0 : i32
    %c0_i32_1 = arith.constant 0 : i32
    return %c0_i32, %c0_i32_0 : i32, i32
  }
  func.func @transform_2(%arg0: i32) -> (i32, i32) {
    %c0_i32 = arith.constant 0 : i32
    %c0_i32_0 = arith.constant 0 : i32
    %c0_i32_1 = arith.constant 0 : i32
    return %c0_i32, %c0_i32_0 : i32, i32
  }
  func.func @transform_3(%arg0: i32) -> (i32, i32) {
    %c0_i32 = arith.constant 0 : i32
    %c0_i32_0 = arith.constant 0 : i32
    return %arg0, %c0_i32 : i32, i32
  }
}

</mosaic_0001>

<bundles_post_ra>
// kernel: tpu_custom_call.1
= control target key start
LH: loop header
LB: loop body
LE: loop exit
PB: predicated region body
PF: predicated region fallthrough
CT: control target
= control target key end

     0   :  { %8 = vsyncpa [#allocation3], 0  ;;  %s779_s0 = inlined_call_operand.hbm [shape: f32[16,32], index: 0, kind: input, shape index: {}]   ;;  %s780_s1 = inlined_call_operand.hbm [shape: bf16[32,32], index: 1, kind: input, shape index: {}]   ;;  %s781_s2 = inlined_call_operand.vmem [shape: f32[1,32], index: 2, kind: input, shape index: {}]   ;;  %s782_s3 = inlined_call_operand.hbm [shape: f32[16,32], index: 3, kind: output, shape index: {}]  }
   0x1   :  { %10 = vsyncpa [#allocation3 + $0x1], 0 }
   0x2   :  { %11 = vsyncpa [#allocation6], 0 }
   0x3   :  { %12 = vsyncpa [#allocation4], 0 }
   0x4   :  { %14 = vsyncpa [#allocation4 + $0x1], 0  ;;  %s610_s12 = smov 0   ;;  %s612_s13 = smov 0  }
   0x5   :  { %s614_s14 = smov 0   ;;  %s616_s15 = smov 0  }
   0x6 LB: > { %s631_s16 = sadd.s32 4294967295, %s581_s15   ;;  %s367_s17 = sadd.s32 4294967294, %s581_s15   ;;  %s581_s15 = sphi %s616_s15, %s804_s15   ;;  %s577_s14 = sphi %s614_s14, %s803_s14   ;;  %s573_s13 = sphi %s612_s13, %s802_s13   ;;  %s569_s12 = sphi %s610_s12, %s801_s12  }
   0x7   : > { %p40_p0 = scmp.ne.s32.totalorder %s573_s13, %s569_s12  ;;  %p783_p1 = scmp.eq.s32.totalorder %s631_s16, 0 }
   0x8   : > { %p112_p3 = scmp.eq.s32.totalorder %s367_s17, 1  ;;  %p368_p5 = scmp.ge.s32.totalorder %s581_s15, 1 }
   0x9   : > { %p640_p4 = por %p783_p1, %p40_p0  ;;  %p119_p7 = scmp.lt.s32.totalorder %s581_s15, 3 }
   0xa   : > { %p645_p6 = por %p112_p3, %p40_p0  ;;  %s583_s21 = smov [#allocation5]  }
   0xb   : > { %s787_s18 = scalar_select %p640_p4, 1, 0 }
   0xc   : > { %s788_s19 = scalar_select %p645_p6, 1, 0 }
   0xd   : > { %p650_p8 = pnand %p368_p5, %p119_p7  ;;  %s131_s22 = sshll.u32 %s583_s21, 4  ;;  %s132_s22 = int_to_ptr.vmem [resolvable:$true] %s131_s22 }
   0xe   : > { %s664_s24 = sadd.s32 1, %s581_s15   ;;  %s27_s25 = sadd.s32 1, %s577_s14 }
   0xf   : > { %s789_s20 = scalar_select %p650_p8, 1, 0 }
  0x10   : > { %p404_p9 = pneg %p650_p8  ;;  %s24_s26 = ssub.s32 %s581_s15, %s664_s24 }
  0x11   : > { %s470_s27 = scalar_lea.vmem %s132_s22, 256  ;;  %p478_p5 = scmp.lt.s32.totalorder %s132_s22, %s132_s22 }
  0x12   : > { %p659_p11 = pnand %p404_p9, %p783_p1  ;;  %p471_p13 = scmp.ne.s32.totalorder %s132_s22, %s470_s27 }
  0x13   : > { %p479_p7 = scmp.lt.s32.totalorder %s470_s27, %s470_s27 }
  0x14   : > { %p461_p12 = pneg %p659_p11 }
  0x15   : > { %p480_p10 = por %p479_p7, %p478_p5 }
  0x16   : > { %p473_p0 = pnand %p471_p13, %p461_p12 }
  0x18   : > { %p474_p3 = pneg %p473_p0 }
  0x1a   : > { %p481_p2 = pnand %p480_p10, %p474_p3 }
  0x1c   : > { %484 = shalt.err (!%p481_p2)
}
  0x1d   : > { %s584_s28 = smov 64   ;;  %s585_s29 = smov 4  }
  0x1e   : > { %407 = dma.hbm_to_vmem [thread:$0]  (!%p659_p11), %s780_s1, 256, %s132_s22, [#allocation6], %s584_s28, %s584_s28, %s585_s29  }
  0x1f   : > { %p25_p9 = scmp.eq.s32.totalorder %s24_s26, 0  ;;  %p34_p12 = scmp.ne.s32.totalorder %s577_s14, %s573_s13 }
  0x20   : > { %p35_p10 = scmp.eq.s32.totalorder %s581_s15, 0  ;;  %p417_p2 = scmp.lt.s32.totalorder %s581_s15, 2 }
  0x21   : > { %s681_s5 = scalar_select %p25_p9, %s577_s14, %s27_s25  }
  0x22   : > { %p36_p13 = por %p35_p10, %p34_p12  ;;  %p791_p0 = scmp.eq.s32.totalorder %s631_s16, 1 }
  0x23   : > { %s148_s7 = sand.u32 1, %s577_s14   ;;  %s372_s8 = sshll.u32 %s581_s15, 7 }
  0x24   : > { %p685_p3 = por %p791_p0, %p34_p12  ;;  %s371_s9 = sshll.u32 %s148_s7, 3 }
  0x25   : > { %s694_s17 = scalar_lea.hbm %s779_s0, %s372_s8  ;;  %s152_s21 = scalar_lea.vmem [#allocation2], %s371_s9 }
  0x26   : > { %s792_s6 = scalar_select %p685_p3, 1, 0 }
  0x27   : > { %s159_s22 = sshll.u32 %s152_s21, 4  ;;  %p696_p11 = pnand %p417_p2, %p36_p13  ;;  %s160_s22 = int_to_ptr.vmem [resolvable:$true] %s159_s22 }
  0x28   : > { %s149_s25 = scalar_lea.sflag [#allocation3], %s148_s7  ;;  %s485_s26 = scalar_lea.hbm %s694_s17, 128 }
  0x29   : > { %p486_p5 = scmp.ne.s32.totalorder %s694_s17, %s485_s26  ;;  %p487_p7 = pneg %p696_p11 }
  0x2a   : > { %s490_s29 = scalar_lea.hbm %s779_s0, 256  ;;  %p491_p10 = scmp.lt.s32.totalorder %s694_s17, %s779_s0 }
  0x2b   : > { %p488_p9 = pnand %p487_p7, %p486_p5  ;;  %p492_p2 = scmp.lt.s32.totalorder %s490_s29, %s485_s26 }
  0x2d   : > { %p489_p12 = pneg %p488_p9  ;;  %p493_p13 = por %p492_p2, %p491_p10 }
  0x2f   : > { %p494_p0 = pnand %p493_p13, %p489_p12 }
  0x31   : > { %497 = shalt.err (!%p494_p0)
}
  0x32   : > { %s498_s8 = scalar_lea.vmem %s160_s22, 128  ;;  %s586_s7 = smov [#allocation2]  }
  0x33   : > { %p499_p1 = scmp.ne.s32.totalorder %s160_s22, %s498_s8  ;;  %s503_s9 = sshll.u32 %s586_s7, 4  ;;  %s504_s9 = int_to_ptr.vmem [resolvable:$false] %s503_s9 }
  0x34   : > { %s505_s10 = scalar_lea.vmem %s504_s9, 256  ;;  %p506_p5 = scmp.lt.s32.totalorder %s160_s22, %s504_s9 }
  0x35   : > { %p501_p6 = pnand %p499_p1, %p487_p7  ;;  %p507_p9 = scmp.lt.s32.totalorder %s505_s10, %s498_s8 }
  0x37   : > { %p502_p3 = pneg %p501_p6  ;;  %p508_p4 = por %p507_p9, %p506_p5 }
  0x39   : > { %p509_p8 = pnand %p508_p4, %p502_p3 }
  0x3b   : > { %512 = shalt.err (!%p509_p8)
}
  0x3c   : > { %411 = dma.hbm_to_vmem [thread:$0]  (!%p696_p11), %s694_s17, 128, %s160_s22, %s149_s25  }
  0x3d   : > { %p794_p12 = scmp.ne.s32.totalorder %s789_s20, 0 }
  0x3e   : > { %s717_s11 = sand.u32 (!%p794_p12), 1, %s573_s13   ;;  %p795_p1 = scmp.ne.s32.totalorder (!%p794_p12), %s787_s18, 0 }
  0x3f   : > { %168 = sbr.rel (%p794_p12) target bundleno = 292 (0x124), region = 32  ;;  %s374_s21 = sshll.u32 (!%p794_p12), %s717_s11, 3 }
  0x40   : > { %s171_s26 = scalar_lea.sflag (!%p794_p12), [#allocation3], %s717_s11  ;;  %s174_s27 = scalar_lea.vmem (!%p794_p12), [#allocation2], %s374_s21 }
  0x44   : > { %556 = dma.done.wait (%p795_p1), %s171_s26, 128  }
  0x45   : > { %558 = vsyncadd (%p795_p1), %s171_s26, 4294967168  ;;  %p796_p4 = scmp.eq.s32.totalorder %s631_s16, 0 }
  0x47   : > { %560 = dma.done.wait (%p796_p4), [#allocation6], 256   ;;  %p797_p6 = pmov %p796_p4 }
  0x48   : > { %v587_v0 = vmov 0.0   ;;  %vm588_vm0 = vmmov 0   ;;  %v457_v1 = vld [vmem:[#allocation5 + $0x8] sm:$0xff]   ;;  %v458_v2 = vld [vmem:[#allocation5] sm:$0xff]   ;;  %v202_v3 = vld [vmem:[%s174_s27] sm:$0xff]  ;;  %vm227_vm1 = vcmask 261120  }
  0x49   : > { %562 = vsyncadd (%p797_p6), [#allocation6], 4294967040  ;;  %388 = vmatprep.subr.bf16.mxu0 %v587_v0  ;;  %392 = vmatprep.mubr.msk.bf16.mxu0 %vm588_vm0, %v587_v0  ;;  %v203_v4 = vpack.c.bf16 %v202_v3, %v202_v3  ;;  %v377_v5 = vld [vmem:[%s781_s2] ss:$0 sm:$0xff]  ;;  %s382_s17 = sshll.u32 %s631_s16, 7  ;;  %s200_s22 = scalar_lea.vmem [#allocation7], %s374_s21 }
  0x4a   : > { %389 = vmatpush3.bf16.msra.mxu0 %v457_v1  ;;  %s287_s23 = sshll.u32 %s200_s22, 4  ;;  %s736_s29 = scalar_lea.hbm %s782_s3, %s382_s17  ;;  %s738_s23 = int_to_ptr.vmem [resolvable:$true] %s287_s23 }
  0x4b   : > { %390 = vmatprep.subr.bf16.mxu0 %v587_v0  ;;  %s274_s30 = scalar_lea.sflag [#allocation4], %s717_s11  ;;  %s513_s16 = scalar_lea.vmem %s738_s23, 128 }
  0x4c   : > { %p514_p8 = scmp.ne.s32.totalorder %s738_s23, %s513_s16  ;;  %p798_p3 = scmp.ne.s32.totalorder %s792_s6, 0 }
  0x4d   : > { %s589_s4 = smov [#allocation7]  }
  0x4e   : > { %391 = vmatpush3.bf16.msra.mxu0 %v458_v2  ;;  %p515_p11 = pnand %p514_p8, %p798_p3  ;;  %s517_s8 = sshll.u32 %s589_s4, 4  ;;  %s518_s8 = int_to_ptr.vmem [resolvable:$false] %s517_s8 }
  0x4f   : > { %s519_s7 = scalar_lea.vmem %s518_s8, 256  ;;  %p520_p10 = scmp.lt.s32.totalorder %s738_s23, %s518_s8 }
  0x50   : > { %p516_p7 = pneg %p515_p11  ;;  %p521_p2 = scmp.lt.s32.totalorder %s519_s7, %s513_s16 }
  0x51   : > { %393 = vmatmul.mubr.msk.bf16.vlgmr.msra.gmra.mxu0 %vm227_vm1, %v203_v4 }
  0x52   : > { %p522_p13 = por %p521_p2, %p520_p10 }
  0x54   : > { %p523_p0 = pnand %p522_p13, %p516_p7 }
 0x111   : > { %v265_v6 = vpop.f32.mrf.mxu0 }
 0x112   : > { %v266_v7 = vadd.f32 %v377_v5, %v265_v6 }
 0x113   : > { %v394_v8 = vpop.f32.mrf.mxu0 }
 0x114   : > { %v271_v9 = vadd.f32 %v266_v7, %v202_v3 }
 0x115   : > { %v268_v10 = vpop.f32.mrf.mxu0 }
 0x116   : > { %272 = vst.msk [vmem:[%s200_s22] sm:$0xff] %vm227_vm1, %v271_v9 }
 0x117   : > { %v395_v11 = vpop.f32.mrf.mxu0 }
 0x118   : > { %526 = shalt.err (!%p523_p0)
}
 0x119   : > { %s527_s9 = scalar_lea.hbm %s736_s29, 128  ;;  %s531_s21 = scalar_lea.hbm %s782_s3, 256 }
 0x11a   : > { %p528_p5 = scmp.ne.s32.totalorder %s736_s29, %s527_s9  ;;  %p532_p1 = scmp.lt.s32.totalorder %s736_s29, %s782_s3 }
 0x11b   : > { %p533_p4 = scmp.lt.s32.totalorder %s531_s21, %s527_s9 }
 0x11c   : > { %p529_p9 = pnand %p528_p5, %p798_p3 }
 0x11d   : > { %p534_p6 = por %p533_p4, %p532_p1 }
 0x11e   : > { %p530_p12 = pneg %p529_p9 }
 0x120   : > { %p535_p8 = pnand %p534_p6, %p530_p12 }
 0x122   : > { %538 = shalt.err (!%p535_p8)
}
 0x123   : > { %402 = dma.vmem_to_hbm [thread:$0]  (%p798_p3), %s738_s23, 128, %s736_s29, %s274_s30  }
 0x124 PF: > { %s299_s18 = sand.u32 1, %s569_s12   ;;  %p799_p11 = scmp.ne.s32.totalorder %s788_s19, 0 }
 0x125   : > { %p800_p7 = scmp.ge.s32.totalorder %s581_s15, 2  ;;  %s300_s20 = scalar_lea.sflag [#allocation4], %s299_s18 }
 0x127   : > { %p413_p10 = pnand %p800_p7, %p799_p11 }
 0x129   : > { %p414_p2 = pneg %p413_p10 }
 0x12b   : > { %564 = dma.done.wait (%p414_p2), %s300_s20, 128  }
 0x12c   : > { %566 = vsyncadd (%p414_p2), %s300_s20, 4294967168  ;;  %p17_p13 = scmp.ge.s32.totalorder %s664_s24, 4   ;;  %s801_s12 = smov %s573_s13 }
 0x12d   : > { %s802_s13 = smov %s577_s14  ;;  %s803_s14 = smov %s681_s5 }
 0x12e   : > { %s804_s15 = smov %s664_s24  ;;  %19 = sbr.rel (!%p17_p13) target bundleno = 6 (0x6), region = 81 }
 0x133   :  { %305 = vsyncpa [#allocation3], 1 }
 0x134   :  { %307 = vsyncpa [#allocation3 + $0x1], 1 }
 0x135   :  { %308 = vsyncpa [#allocation6], 1 }
 0x136   :  { %309 = vsyncpa [#allocation4], 1 }
 0x137   :  { %311 = vsyncpa [#allocation4 + $0x1], 1 }

</bundles_post_ra>
